<compile_context>
chip_gen: v6e
topology: v6e:2x2x1
jax: 0.10.0
libtpu: 0.0.40
codegen_flags: <defaults>
</compile_context>

<pallas_src>
import functools

import jax
import jax.numpy as jnp
from jax import lax
from jax.experimental import pallas as pl
from jax.experimental.pallas import tpu as pltpu


def _round_up(x, m):
    return ((x + m - 1) // m) * m


def _is_dual_tensorcore_chip():
    """True only for chips with 2 TensorCores per chip (v7x); v5e/v6e -> False."""
    try:
        kind = jax.devices()[0].device_kind.lower()
    except Exception:
        return False
    return ("v7" in kind) or ("7x" in kind) or ("tpu7" in kind)


def rnn_mean_kernel(nvc_ref, z_ref, w_hh_ref, len_ref, out_ref, h_scratch, *, unroll):
    """Grid = (batch_blocks, time_chunks). One grid step = TC recurrent steps.

    nvc_ref    : (1,)            SMEM: number of time chunks containing valid steps
    z_ref      : (TC, BB, Hp)    precomputed x @ W_ih^T + b, time-major chunk
    w_hh_ref   : (Hp, Hp)        W_hh transposed (resident, DMA'd once)
    len_ref    : (BB, 1)         int32 sequence lengths
    out_ref    : (BB, Hp)        resident accumulator -> final mean
    h_scratch  : (BB, Hp)        recurrent hidden state (persists across chunks)
    """
    c = pl.program_id(1)
    tc = z_ref.shape[0]           # static chunk length
    nvc = nvc_ref[0]

    @pl.when(c == 0)
    def _init():
        h_scratch[...] = jnp.zeros_like(h_scratch)
        out_ref[...] = jnp.zeros_like(out_ref)

    # Skip compute for chunks past max(lengths); the Z index_map also clamps the
    # block index there so no DMA is issued for dead chunks.
    @pl.when(c < nvc)
    def _compute():
        len_i = len_ref[...]          # (BB, 1) int32
        t0 = c * tc

        def step(i, carry):
            h_prev, acc = carry
            z_t = z_ref[i].astype(jnp.float32)     # (BB, Hp) per-step VMEM load
            # Load W_hh^T inside the step (not hoisted across the unrolled
            # loop): avoids keeping Hp/8 vregs of weights live the whole chunk.
            # TODO(synk): weight-stationary MXU driving (pltpu.matmul_push_rhs
            # once per chunk + matmul_acc_lhs/matmul_pop per step) would drop
            # the per-step RHS push for very large H.
            h_new = jnp.tanh(
                z_t + jnp.dot(h_prev, w_hh_ref[...],
                              preferred_element_type=jnp.float32))
            # Validity (t < length[b]) is a *prefix* mask and h is never
            # emitted, so we do NOT freeze h past length[b]; carrying h_new
            # directly removes a vselect from the serial critical path.
            valid = ((t0 + i) < len_i).astype(jnp.float32)     # (BB, 1)
            acc = acc + valid * h_new                          # masked accumulation
            return h_new, acc

        h, acc = lax.fori_loop(0, tc, step,
                               (h_scratch[...], out_ref[...]), unroll=unroll)
        h_scratch[...] = h
        out_ref[...] = acc

    # Finalize on the LAST chunk that contains valid steps (not the last grid
    # step): dead chunks past max(lengths) then do no work at all.
    @pl.when(c == nvc - 1)
    def _finalize():
        # all_mean: sum / length.  max(len,1) only protects zero-length padded
        # rows (real rows always have length >= 1 with pack_padded_sequence).
        len_f = jnp.maximum(len_ref[...], 1).astype(jnp.float32)
        out_ref[...] = out_ref[...] * pl.reciprocal(len_f, approx=False)


def rnn_seq_feature_extract(x, lengths, w_ih, w_hh, b_ih, b_hh, *,
                            tc_max=64, store_z_bf16=False):
    """x: (B, T, D) batch-first, lengths: (B,) int. Returns (B, H) float32."""
    B, T, D = x.shape
    H = w_ih.shape[0]
    f32 = jnp.float32

    # Lane/sublane-dense padded sizes.
    B_pad = _round_up(B, 8)
    H_pad = _round_up(H, 128)

    # --- batch blocking: split only when a second TensorCore can take it -----
    dual_tc = _is_dual_tensorcore_chip()
    if dual_tc and B_pad >= 16 and B_pad % 16 == 0:
        BB = B_pad // 2            # one block per v7x TensorCore
    else:
        BB = B_pad                 # v5e/v6e: single block, no serialization
    grid_b = B_pad // BB

    # --- time chunking sized from an explicit VMEM budget ---------------------
    z_elem_bytes = 2 if store_z_bf16 else 4
    z_budget = 24 << 20            # Z double-buffer target (fits v7x 64 MiB w/ W_hh)
    TC = min(tc_max, pl.next_power_of_2(max(T, 1)))
    while TC > 8 and 2 * TC * BB * H_pad * z_elem_bytes > z_budget:
        TC //= 2
    TC = max(TC, 1)
    T_pad = _round_up(T, TC)
    n_chunks = T_pad // TC

    # --- hoisted input projection: one big MXU matmul, written time-major.
    # Transpose the small (B,T,D) activation (not the (T,B,H) result), so no
    # H-sized transpose round trip through HBM.
    # TODO(synk): for H >> D or very long T, fuse this projection into the
    # kernel (DMA raw x chunks) to avoid the T*B*H f32 HBM round trip for Z.
    x_p = jnp.pad(x.astype(f32), ((0, B_pad - B), (0, T_pad - T), (0, 0)))
    x_tm = jnp.transpose(x_p, (1, 0, 2))                                    # (Tp, Bp, D)
    w_ih_t = jnp.pad(w_ih.astype(f32).T, ((0, 0), (0, H_pad - H)))          # (D, Hp)
    w_hh_t = jnp.pad(w_hh.astype(f32).T, ((0, H_pad - H), (0, H_pad - H)))  # (Hp, Hp)
    bias = jnp.pad((b_ih + b_hh).astype(f32), (0, H_pad - H))               # (Hp,)

    z = jnp.einsum('tbd,dh->tbh', x_tm, w_ih_t,
                   preferred_element_type=f32) + bias[None, None, :]        # (Tp, Bp, Hp)
    if store_z_bf16:
        # Halves Z HBM traffic + VMEM buffers; re-validate tolerance before use.
        z = z.astype(jnp.bfloat16)

    len_i = jnp.pad(lengths.astype(jnp.int32), (0, B_pad - B)).reshape(B_pad, 1)

    # Number of time chunks containing any valid step (scalar prefetch).
    max_len = jnp.maximum(jnp.max(lengths.astype(jnp.int32)), 1)
    nvc = ((max_len + TC - 1) // TC).astype(jnp.int32).reshape(1)

    # --- explicit VMEM budget -> compiler limit --------------------------------
    whh_bufs = 1 if H_pad >= 512 else 2
    vmem_needed = (2 * TC * BB * H_pad * z_elem_bytes    # Z (double buffered)
                   + whh_bufs * H_pad * H_pad * 4        # W_hh^T
                   + 2 * BB * H_pad * 4                  # out (resident)
                   + BB * H_pad * 4                      # h_scratch
                   + 4 * BB * 128 * 4)                   # lengths tiles + slack
    phys_cap = (60 << 20) if dual_tc else (100 << 20)    # v7x: 64 MiB physical VMEM
    vmem_limit = int(min(max(vmem_needed + (2 << 20), 32 << 20), phys_cap))

    # W_hh block index is constant -> one pipeline buffer suffices; request it
    # only for large H (where the saved Hp^2*4 bytes matter on v7x).
    if H_pad >= 512:
        whh_spec = pl.BlockSpec((H_pad, H_pad), lambda b, c, nvc: (0, 0),
                                pipeline_mode=pl.Buffered(1))
    else:
        whh_spec = pl.BlockSpec((H_pad, H_pad), lambda b, c, nvc: (0, 0))

    # Full unroll only for small tiles; partial unroll avoids vreg spills when
    # H_pad / BB are large.
    unroll = True if (H_pad <= 256 and BB <= 256) else min(8, TC)

    if grid_b > 1:
        # Only reached on dual-TC chips (v7x): shard the batch axis across cores.
        dim_sem = (pltpu.CORE_PARALLEL, pltpu.ARBITRARY)
    else:
        dim_sem = ("parallel", "arbitrary")

    kernel = functools.partial(rnn_mean_kernel, unroll=unroll)

    out = pl.pallas_call(
        kernel,
        out_shape=jax.ShapeDtypeStruct((B_pad, H_pad), f32),
        grid_spec=pltpu.PrefetchScalarGridSpec(
            num_scalar_prefetch=1,
            grid=(grid_b, n_chunks),
            in_specs=[
                # Z chunk: clamp the chunk index for dead chunks -> DMA skipped.
                pl.BlockSpec((TC, BB, H_pad),
                             lambda b, c, nvc: (jnp.minimum(c, nvc[0] - 1), b, 0)),
                whh_spec,                                                # W_hh^T resident
                pl.BlockSpec((BB, 1), lambda b, c, nvc: (b, 0)),         # lengths
            ],
            out_specs=pl.BlockSpec((BB, H_pad), lambda b, c, nvc: (b, 0)),
            scratch_shapes=[pltpu.VMEM((BB, H_pad), f32)],               # hidden state
        ),
        compiler_params=pltpu.CompilerParams(
            dimension_semantics=dim_sem,
            vmem_limit_bytes=vmem_limit),
    )(nvc, z, w_hh_t, len_i)

    return out[:B, :H]


def _reference(x, lengths, w_ih, w_hh, b_ih, b_hh):
    """Pure-JAX reference matching PyTorch nn.RNN + packed-sequence mean."""
    B, T, D = x.shape
    H = w_ih.shape[0]

    def step(h, xt_and_t):
        xt, t = xt_and_t
        h_new = jnp.tanh(xt @ w_ih.T + b_ih + h @ w_hh.T + b_hh)
        valid = (t < lengths)[:, None]
        h = jnp.where(valid, h_new, h)
        contrib = jnp.where(valid, h_new, 0.0)
        return h, contrib

    h0 = jnp.zeros((B, H), jnp.float32)
    _, contribs = jax.lax.scan(step, h0,
                               (jnp.transpose(x, (1, 0, 2)), jnp.arange(T)))
    return contribs.sum(axis=0) / lengths[:, None].astype(jnp.float32)


if __name__ == "__main__":
    B, T, D, H = 2, 8, 16, 32
    key = jax.random.PRNGKey(0)
    kx, k1, k2, k3, k4 = jax.random.split(key, 5)

    x = jax.random.normal(kx, (B, T, D), dtype=jnp.float32)
    lengths = jnp.array([8, 5], dtype=jnp.int32)

    # Deterministic PyTorch-style init: U(-1/sqrt(H), 1/sqrt(H))
    bound = 1.0 / jnp.sqrt(jnp.float32(H))
    w_ih = jax.random.uniform(k1, (H, D), jnp.float32, -bound, bound)
    w_hh = jax.random.uniform(k2, (H, H), jnp.float32, -bound, bound)
    b_ih = jax.random.uniform(k3, (H,), jnp.float32, -bound, bound)
    b_hh = jax.random.uniform(k4, (H,), jnp.float32, -bound, bound)

    out = rnn_seq_feature_extract(x, lengths, w_ih, w_hh, b_ih, b_hh)
    out = jax.block_until_ready(out)

    ref = _reference(x, lengths, w_ih, w_hh, b_ih, b_hh)
    assert out.shape == (B, H)
    assert jnp.allclose(out, ref, atol=5e-5, rtol=5e-5), "mismatch vs reference"

    print("KERNEL_OK")
</pallas_src>

<mosaic_0001>
module attributes {stable_mosaic.version = 11 : i64} {
  func.func @rnn_mean_kernel(%arg0: i32, %arg1: i32, %arg2: memref<1xi32, #tpu.memory_space<smem>>, %arg3: memref<8x8x128xf32, #tpu.memory_space<vmem>>, %arg4: memref<128x128xf32, #tpu.memory_space<vmem>>, %arg5: memref<8x1xi32, #tpu.memory_space<vmem>>, %arg6: memref<8x128xf32, #tpu.memory_space<vmem>>, %arg7: memref<8x128xf32, #tpu.memory_space<vmem>>) attributes {dimension_semantics = [#tpu.dimension_semantics<parallel>, #tpu.dimension_semantics<arbitrary>], iteration_bounds = array<i64: 1, 1>, scalar_prefetch = 1 : i64, scratch_operands = 1 : i64, tpu.core_type = #tpu.core_type<tc>, window_params = [{transform_indices = @transform_0, window_bounds = array<i64: 8, 8, 128>}, {pipeline_mode = #tpu.pipeline_mode<synchronous>, transform_indices = @transform_1, window_bounds = array<i64: 128, 128>}, {transform_indices = @transform_2, window_bounds = array<i64: 8, 1>}, {transform_indices = @transform_3, window_bounds = array<i64: 8, 128>}]} {
    %c0 = arith.constant 0 : index
    %0 = memref.load %arg2[%c0] : memref<1xi32, #tpu.memory_space<smem>>
    %c0_i32 = arith.constant 0 : i32
    %1 = arith.cmpi eq, %arg1, %c0_i32 : i32
    %2 = arith.extui %1 : i1 to i32
    %c0_i32_0 = arith.constant 0 : i32
    %3 = arith.cmpi ne, %2, %c0_i32_0 : i32
    scf.if %3 {
      %cst = arith.constant 0.000000e+00 : f32
      %11 = vector.broadcast %cst : f32 to vector<8x128xf32>
      %c0_3 = arith.constant 0 : index
      %c0_4 = arith.constant 0 : index
      %12 = vector.load %arg7[%c0_3, %c0_4] : memref<8x128xf32, #tpu.memory_space<vmem>>, vector<8x128xf32>
      tpu.vector_store %arg7[%c0_3, %c0_4], %11 {strides = array<i32>} : memref<8x128xf32, #tpu.memory_space<vmem>>, vector<8x128xf32>,
      %cst_5 = arith.constant 0.000000e+00 : f32
      %13 = vector.broadcast %cst_5 : f32 to vector<8x128xf32>
      %c0_6 = arith.constant 0 : index
      %c0_7 = arith.constant 0 : index
      %14 = vector.load %arg6[%c0_6, %c0_7] : memref<8x128xf32, #tpu.memory_space<vmem>>, vector<8x128xf32>
      tpu.vector_store %arg6[%c0_6, %c0_7], %13 {strides = array<i32>} : memref<8x128xf32, #tpu.memory_space<vmem>>, vector<8x128xf32>,
    } else {
    }
    %4 = arith.cmpi slt, %arg1, %0 : i32
    %5 = arith.extui %4 : i1 to i32
    %c0_i32_1 = arith.constant 0 : i32
    %6 = arith.cmpi ne, %5, %c0_i32_1 : i32
    scf.if %6 {
      %c0_3 = arith.constant 0 : index
      %c0_4 = arith.constant 0 : index
      %11 = vector.load %arg5[%c0_3, %c0_4] : memref<8x1xi32, #tpu.memory_space<vmem>>, vector<8x1xi32>
      %c8_i32 = arith.constant 8 : i32
      %12 = arith.muli %arg1, %c8_i32 : i32
      %c0_5 = arith.constant 0 : index
      %c0_6 = arith.constant 0 : index
      %13 = vector.load %arg7[%c0_5, %c0_6] : memref<8x128xf32, #tpu.memory_space<vmem>>, vector<8x128xf32>
      %c0_7 = arith.constant 0 : index
      %c0_8 = arith.constant 0 : index
      %14 = vector.load %arg6[%c0_7, %c0_8] : memref<8x128xf32, #tpu.memory_space<vmem>>, vector<8x128xf32>
      %c0_i32_9 = arith.constant 0 : i32
      %15 = arith.index_cast %c0_i32_9 : i32 to index
      %c0_10 = arith.constant 0 : index
      %c0_11 = arith.constant 0 : index
      %16 = vector.load %arg3[%15, %c0_10, %c0_11] : memref<8x8x128xf32, #tpu.memory_space<vmem>>, vector<1x8x128xf32>
      %17 = vector.shape_cast %16 : vector<1x8x128xf32> to vector<8x128xf32>
      %c0_12 = arith.constant 0 : index
      %c0_13 = arith.constant 0 : index
      %18 = vector.load %arg4[%c0_12, %c0_13] : memref<128x128xf32, #tpu.memory_space<vmem>>, vector<128x128xf32>
      %cst = arith.constant dense<0.000000e+00> : vector<8x128xf32>
      %19 = tpu.matmul %13, %18, %cst {dimension_numbers = #tpu.dot_dimension_numbers<[1], [0], [0], [1], [0, 0, 1, 1], [], []>} : vector<8x128xf32>, vector<128x128xf32>, vector<8x128xf32> -> vector<8x128xf32>
      %20 = arith.addf %17, %19 : vector<8x128xf32>
      %21 = math.tanh %20 : vector<8x128xf32>
      %22 = arith.addi %12, %c0_i32_9 : i32
      %23 = vector.broadcast %22 : i32 to vector<8x1xi32>
      %24 = arith.cmpi slt, %23, %11 : vector<8x1xi32>
      %25 = arith.extui %24 : vector<8x1xi1> to vector<8x1xi32>
      %26 = arith.sitofp %25 : vector<8x1xi32> to vector<8x1xf32>
      %27 = vector.broadcast %26 : vector<8x1xf32> to vector<8x128xf32>
      %28 = arith.mulf %27, %21 : vector<8x128xf32>
      %29 = arith.addf %14, %28 : vector<8x128xf32>
      %c1_i32_14 = arith.constant 1 : i32
      %30 = arith.index_cast %c1_i32_14 : i32 to index
      %c0_15 = arith.constant 0 : index
      %c0_16 = arith.constant 0 : index
      %31 = vector.load %arg3[%30, %c0_15, %c0_16] : memref<8x8x128xf32, #tpu.memory_space<vmem>>, vector<1x8x128xf32>
      %32 = vector.shape_cast %31 : vector<1x8x128xf32> to vector<8x128xf32>
      %c0_17 = arith.constant 0 : index
      %c0_18 = arith.constant 0 : index
      %33 = vector.load %arg4[%c0_17, %c0_18] : memref<128x128xf32, #tpu.memory_space<vmem>>, vector<128x128xf32>
      %cst_19 = arith.constant dense<0.000000e+00> : vector<8x128xf32>
      %34 = tpu.matmul %21, %33, %cst_19 {dimension_numbers = #tpu.dot_dimension_numbers<[1], [0], [0], [1], [0, 0, 1, 1], [], []>} : vector<8x128xf32>, vector<128x128xf32>, vector<8x128xf32> -> vector<8x128xf32>
      %35 = arith.addf %32, %34 : vector<8x128xf32>
      %36 = math.tanh %35 : vector<8x128xf32>
      %37 = arith.addi %12, %c1_i32_14 : i32
      %38 = vector.broadcast %37 : i32 to vector<8x1xi32>
      %39 = arith.cmpi slt, %38, %11 : vector<8x1xi32>
      %40 = arith.extui %39 : vector<8x1xi1> to vector<8x1xi32>
      %41 = arith.sitofp %40 : vector<8x1xi32> to vector<8x1xf32>
      %42 = vector.broadcast %41 : vector<8x1xf32> to vector<8x128xf32>
      %43 = arith.mulf %42, %36 : vector<8x128xf32>
      %44 = arith.addf %29, %43 : vector<8x128xf32>
      %c2_i32 = arith.constant 2 : i32
      %45 = arith.index_cast %c2_i32 : i32 to index
      %c0_20 = arith.constant 0 : index
      %c0_21 = arith.constant 0 : index
      %46 = vector.load %arg3[%45, %c0_20, %c0_21] : memref<8x8x128xf32, #tpu.memory_space<vmem>>, vector<1x8x128xf32>
      %47 = vector.shape_cast %46 : vector<1x8x128xf32> to vector<8x128xf32>
      %c0_22 = arith.constant 0 : index
      %c0_23 = arith.constant 0 : index
      %48 = vector.load %arg4[%c0_22, %c0_23] : memref<128x128xf32, #tpu.memory_space<vmem>>, vector<128x128xf32>
      %cst_24 = arith.constant dense<0.000000e+00> : vector<8x128xf32>
      %49 = tpu.matmul %36, %48, %cst_24 {dimension_numbers = #tpu.dot_dimension_numbers<[1], [0], [0], [1], [0, 0, 1, 1], [], []>} : vector<8x128xf32>, vector<128x128xf32>, vector<8x128xf32> -> vector<8x128xf32>
      %50 = arith.addf %47, %49 : vector<8x128xf32>
      %51 = math.tanh %50 : vector<8x128xf32>
      %52 = arith.addi %12, %c2_i32 : i32
      %53 = vector.broadcast %52 : i32 to vector<8x1xi32>
      %54 = arith.cmpi slt, %53, %11 : vector<8x1xi32>
      %55 = arith.extui %54 : vector<8x1xi1> to vector<8x1xi32>
      %56 = arith.sitofp %55 : vector<8x1xi32> to vector<8x1xf32>
      %57 = vector.broadcast %56 : vector<8x1xf32> to vector<8x128xf32>
      %58 = arith.mulf %57, %51 : vector<8x128xf32>
      %59 = arith.addf %44, %58 : vector<8x128xf32>
      %c3_i32 = arith.constant 3 : i32
      %60 = arith.index_cast %c3_i32 : i32 to index
      %c0_25 = arith.constant 0 : index
      %c0_26 = arith.constant 0 : index
      %61 = vector.load %arg3[%60, %c0_25, %c0_26] : memref<8x8x128xf32, #tpu.memory_space<vmem>>, vector<1x8x128xf32>
      %62 = vector.shape_cast %61 : vector<1x8x128xf32> to vector<8x128xf32>
      %c0_27 = arith.constant 0 : index
      %c0_28 = arith.constant 0 : index
      %63 = vector.load %arg4[%c0_27, %c0_28] : memref<128x128xf32, #tpu.memory_space<vmem>>, vector<128x128xf32>
      %cst_29 = arith.constant dense<0.000000e+00> : vector<8x128xf32>
      %64 = tpu.matmul %51, %63, %cst_29 {dimension_numbers = #tpu.dot_dimension_numbers<[1], [0], [0], [1], [0, 0, 1, 1], [], []>} : vector<8x128xf32>, vector<128x128xf32>, vector<8x128xf32> -> vector<8x128xf32>
      %65 = arith.addf %62, %64 : vector<8x128xf32>
      %66 = math.tanh %65 : vector<8x128xf32>
      %67 = arith.addi %12, %c3_i32 : i32
      %68 = vector.broadcast %67 : i32 to vector<8x1xi32>
      %69 = arith.cmpi slt, %68, %11 : vector<8x1xi32>
      %70 = arith.extui %69 : vector<8x1xi1> to vector<8x1xi32>
      %71 = arith.sitofp %70 : vector<8x1xi32> to vector<8x1xf32>
      %72 = vector.broadcast %71 : vector<8x1xf32> to vector<8x128xf32>
      %73 = arith.mulf %72, %66 : vector<8x128xf32>
      %74 = arith.addf %59, %73 : vector<8x128xf32>
      %c4_i32 = arith.constant 4 : i32
      %75 = arith.index_cast %c4_i32 : i32 to index
      %c0_30 = arith.constant 0 : index
      %c0_31 = arith.constant 0 : index
      %76 = vector.load %arg3[%75, %c0_30, %c0_31] : memref<8x8x128xf32, #tpu.memory_space<vmem>>, vector<1x8x128xf32>
      %77 = vector.shape_cast %76 : vector<1x8x128xf32> to vector<8x128xf32>
      %c0_32 = arith.constant 0 : index
      %c0_33 = arith.constant 0 : index
      %78 = vector.load %arg4[%c0_32, %c0_33] : memref<128x128xf32, #tpu.memory_space<vmem>>, vector<128x128xf32>
      %cst_34 = arith.constant dense<0.000000e+00> : vector<8x128xf32>
      %79 = tpu.matmul %66, %78, %cst_34 {dimension_numbers = #tpu.dot_dimension_numbers<[1], [0], [0], [1], [0, 0, 1, 1], [], []>} : vector<8x128xf32>, vector<128x128xf32>, vector<8x128xf32> -> vector<8x128xf32>
      %80 = arith.addf %77, %79 : vector<8x128xf32>
      %81 = math.tanh %80 : vector<8x128xf32>
      %82 = arith.addi %12, %c4_i32 : i32
      %83 = vector.broadcast %82 : i32 to vector<8x1xi32>
      %84 = arith.cmpi slt, %83, %11 : vector<8x1xi32>
      %85 = arith.extui %84 : vector<8x1xi1> to vector<8x1xi32>
      %86 = arith.sitofp %85 : vector<8x1xi32> to vector<8x1xf32>
      %87 = vector.broadcast %86 : vector<8x1xf32> to vector<8x128xf32>
      %88 = arith.mulf %87, %81 : vector<8x128xf32>
      %89 = arith.addf %74, %88 : vector<8x128xf32>
      %c5_i32 = arith.constant 5 : i32
      %90 = arith.index_cast %c5_i32 : i32 to index
      %c0_35 = arith.constant 0 : index
      %c0_36 = arith.constant 0 : index
      %91 = vector.load %arg3[%90, %c0_35, %c0_36] : memref<8x8x128xf32, #tpu.memory_space<vmem>>, vector<1x8x128xf32>
      %92 = vector.shape_cast %91 : vector<1x8x128xf32> to vector<8x128xf32>
      %c0_37 = arith.constant 0 : index
      %c0_38 = arith.constant 0 : index
      %93 = vector.load %arg4[%c0_37, %c0_38] : memref<128x128xf32, #tpu.memory_space<vmem>>, vector<128x128xf32>
      %cst_39 = arith.constant dense<0.000000e+00> : vector<8x128xf32>
      %94 = tpu.matmul %81, %93, %cst_39 {dimension_numbers = #tpu.dot_dimension_numbers<[1], [0], [0], [1], [0, 0, 1, 1], [], []>} : vector<8x128xf32>, vector<128x128xf32>, vector<8x128xf32> -> vector<8x128xf32>
      %95 = arith.addf %92, %94 : vector<8x128xf32>
      %96 = math.tanh %95 : vector<8x128xf32>
      %97 = arith.addi %12, %c5_i32 : i32
      %98 = vector.broadcast %97 : i32 to vector<8x1xi32>
      %99 = arith.cmpi slt, %98, %11 : vector<8x1xi32>
      %100 = arith.extui %99 : vector<8x1xi1> to vector<8x1xi32>
      %101 = arith.sitofp %100 : vector<8x1xi32> to vector<8x1xf32>
      %102 = vector.broadcast %101 : vector<8x1xf32> to vector<8x128xf32>
      %103 = arith.mulf %102, %96 : vector<8x128xf32>
      %104 = arith.addf %89, %103 : vector<8x128xf32>
      %c6_i32 = arith.constant 6 : i32
      %105 = arith.index_cast %c6_i32 : i32 to index
      %c0_40 = arith.constant 0 : index
      %c0_41 = arith.constant 0 : index
      %106 = vector.load %arg3[%105, %c0_40, %c0_41] : memref<8x8x128xf32, #tpu.memory_space<vmem>>, vector<1x8x128xf32>
      %107 = vector.shape_cast %106 : vector<1x8x128xf32> to vector<8x128xf32>
      %c0_42 = arith.constant 0 : index
      %c0_43 = arith.constant 0 : index
      %108 = vector.load %arg4[%c0_42, %c0_43] : memref<128x128xf32, #tpu.memory_space<vmem>>, vector<128x128xf32>
      %cst_44 = arith.constant dense<0.000000e+00> : vector<8x128xf32>
      %109 = tpu.matmul %96, %108, %cst_44 {dimension_numbers = #tpu.dot_dimension_numbers<[1], [0], [0], [1], [0, 0, 1, 1], [], []>} : vector<8x128xf32>, vector<128x128xf32>, vector<8x128xf32> -> vector<8x128xf32>
      %110 = arith.addf %107, %109 : vector<8x128xf32>
      %111 = math.tanh %110 : vector<8x128xf32>
      %112 = arith.addi %12, %c6_i32 : i32
      %113 = vector.broadcast %112 : i32 to vector<8x1xi32>
      %114 = arith.cmpi slt, %113, %11 : vector<8x1xi32>
      %115 = arith.extui %114 : vector<8x1xi1> to vector<8x1xi32>
      %116 = arith.sitofp %115 : vector<8x1xi32> to vector<8x1xf32>
      %117 = vector.broadcast %116 : vector<8x1xf32> to vector<8x128xf32>
      %118 = arith.mulf %117, %111 : vector<8x128xf32>
      %119 = arith.addf %104, %118 : vector<8x128xf32>
      %c7_i32 = arith.constant 7 : i32
      %120 = arith.index_cast %c7_i32 : i32 to index
      %c0_45 = arith.constant 0 : index
      %c0_46 = arith.constant 0 : index
      %121 = vector.load %arg3[%120, %c0_45, %c0_46] : memref<8x8x128xf32, #tpu.memory_space<vmem>>, vector<1x8x128xf32>
      %122 = vector.shape_cast %121 : vector<1x8x128xf32> to vector<8x128xf32>
      %c0_47 = arith.constant 0 : index
      %c0_48 = arith.constant 0 : index
      %123 = vector.load %arg4[%c0_47, %c0_48] : memref<128x128xf32, #tpu.memory_space<vmem>>, vector<128x128xf32>
      %cst_49 = arith.constant dense<0.000000e+00> : vector<8x128xf32>
      %124 = tpu.matmul %111, %123, %cst_49 {dimension_numbers = #tpu.dot_dimension_numbers<[1], [0], [0], [1], [0, 0, 1, 1], [], []>} : vector<8x128xf32>, vector<128x128xf32>, vector<8x128xf32> -> vector<8x128xf32>
      %125 = arith.addf %122, %124 : vector<8x128xf32>
      %126 = math.tanh %125 : vector<8x128xf32>
      %127 = arith.addi %12, %c7_i32 : i32
      %128 = vector.broadcast %127 : i32 to vector<8x1xi32>
      %129 = arith.cmpi slt, %128, %11 : vector<8x1xi32>
      %130 = arith.extui %129 : vector<8x1xi1> to vector<8x1xi32>
      %131 = arith.sitofp %130 : vector<8x1xi32> to vector<8x1xf32>
      %132 = vector.broadcast %131 : vector<8x1xf32> to vector<8x128xf32>
      %133 = arith.mulf %132, %126 : vector<8x128xf32>
      %134 = arith.addf %119, %133 : vector<8x128xf32>
      %c8_i32_50 = arith.constant 8 : i32
      %c0_51 = arith.constant 0 : index
      %c0_52 = arith.constant 0 : index
      %135 = vector.load %arg7[%c0_51, %c0_52] : memref<8x128xf32, #tpu.memory_space<vmem>>, vector<8x128xf32>
      tpu.vector_store %arg7[%c0_51, %c0_52], %126 {strides = array<i32>} : memref<8x128xf32, #tpu.memory_space<vmem>>, vector<8x128xf32>,
      %c0_53 = arith.constant 0 : index
      %c0_54 = arith.constant 0 : index
      %136 = vector.load %arg6[%c0_53, %c0_54] : memref<8x128xf32, #tpu.memory_space<vmem>>, vector<8x128xf32>
      tpu.vector_store %arg6[%c0_53, %c0_54], %134 {strides = array<i32>} : memref<8x128xf32, #tpu.memory_space<vmem>>, vector<8x128xf32>,
    } else {
    }
    %c1_i32 = arith.constant 1 : i32
    %7 = arith.subi %0, %c1_i32 : i32
    %8 = arith.cmpi eq, %arg1, %7 : i32
    %9 = arith.extui %8 : i1 to i32
    %c0_i32_2 = arith.constant 0 : i32
    %10 = arith.cmpi ne, %9, %c0_i32_2 : i32
    scf.if %10 {
      %c0_3 = arith.constant 0 : index
      %c0_4 = arith.constant 0 : index
      %11 = vector.load %arg5[%c0_3, %c0_4] : memref<8x1xi32, #tpu.memory_space<vmem>>, vector<8x1xi32>
      %c1_i32_5 = arith.constant 1 : i32
      %12 = vector.broadcast %c1_i32_5 : i32 to vector<8x1xi32>
      %13 = arith.maxsi %11, %12 : vector<8x1xi32>
      %14 = arith.sitofp %13 : vector<8x1xi32> to vector<8x1xf32>
      %c0_6 = arith.constant 0 : index
      %c0_7 = arith.constant 0 : index
      %15 = vector.load %arg6[%c0_6, %c0_7] : memref<8x128xf32, #tpu.memory_space<vmem>>, vector<8x128xf32>
      %16 = tpu.reciprocal %14 : vector<8x1xf32> -> vector<8x1xf32>
      %17 = vector.broadcast %16 : vector<8x1xf32> to vector<8x128xf32>
      %18 = arith.mulf %15, %17 : vector<8x128xf32>
      %c0_8 = arith.constant 0 : index
      %c0_9 = arith.constant 0 : index
      %19 = vector.load %arg6[%c0_8, %c0_9] : memref<8x128xf32, #tpu.memory_space<vmem>>, vector<8x128xf32>
      tpu.vector_store %arg6[%c0_8, %c0_9], %18 {strides = array<i32>} : memref<8x128xf32, #tpu.memory_space<vmem>>, vector<8x128xf32>,
    } else {
    }
    return
  }
  func.func @transform_0(%arg0: i32, %arg1: i32, %arg2: memref<1xi32, #tpu.memory_space<smem>>) -> (i32, i32, i32) {
    %c0 = arith.constant 0 : index
    %0 = memref.load %arg2[%c0] : memref<1xi32, #tpu.memory_space<smem>>
    %c1_i32 = arith.constant 1 : i32
    %1 = arith.subi %0, %c1_i32 : i32
    %2 = arith.minsi %arg1, %1 : i32
    %c0_i32 = arith.constant 0 : i32
    %c0_i32_0 = arith.constant 0 : i32
    return %2, %arg0, %c0_i32 : i32, i32, i32
  }
  func.func @transform_1(%arg0: i32, %arg1: i32, %arg2: memref<1xi32, #tpu.memory_space<smem>>) -> (i32, i32) {
    %c0_i32 = arith.constant 0 : i32
    %c0_i32_0 = arith.constant 0 : i32
    %c0_i32_1 = arith.constant 0 : i32
    return %c0_i32, %c0_i32_0 : i32, i32
  }
  func.func @transform_2(%arg0: i32, %arg1: i32, %arg2: memref<1xi32, #tpu.memory_space<smem>>) -> (i32, i32) {
    %c0_i32 = arith.constant 0 : i32
    %c0_i32_0 = arith.constant 0 : i32
    return %arg0, %c0_i32 : i32, i32
  }
  func.func @transform_3(%arg0: i32, %arg1: i32, %arg2: memref<1xi32, #tpu.memory_space<smem>>) -> (i32, i32) {
    %c0_i32 = arith.constant 0 : i32
    %c0_i32_0 = arith.constant 0 : i32
    return %arg0, %c0_i32 : i32, i32
  }
}

</mosaic_0001>

<bundles_post_ra>
// kernel: tpu_custom_call.1
= control target key start
LH: loop header
LB: loop body
LE: loop exit
PB: predicated region body
PF: predicated region fallthrough
CT: control target
= control target key end

     0   :  { %10 = vsyncpa [#allocation6], 0  ;;  %s1751_s0 = inlined_call_operand.<no memory space> [shape: s32[1], index: 0, kind: input, shape index: {}]   ;;  %s1752_s1 = inlined_call_operand.hbm [shape: f32[8,8,128], index: 1, kind: input, shape index: {}]   ;;  %s1753_s2 = inlined_call_operand.hbm [shape: f32[128,128], index: 2, kind: input, shape index: {}]   ;;  %s1754_s3 = inlined_call_operand.vmem [shape: s32[8,1], index: 3, kind: input, shape index: {}]   ;;  %s1755_s4 = inlined_call_operand.hbm [shape: f32[8,128], index: 4, kind: output, shape index: {}]  }
   0x1   :  { %11 = vsyncpa [#allocation9], 0 }
   0x2   :  { %12 = vsyncpa [#allocation7], 0  ;;  %s1391_s17 = sadd.s32 4294967295, %s1751_s0  ;;  %s1353_s18 = smov [#allocation5]  }
   0x3   :  { %p813_p0 = scmp.gt.s32.totalorder %s1391_s17, 0  ;;  %s25_s19 = sshll.u32 %s1353_s18, 4  ;;  %s26_s19 = int_to_ptr.vmem [resolvable:$true] %s25_s19 }
   0x4   :  { %s1354_s22 = smov [#allocation8]   ;;  %s1287_s30 = scalar_lea.hbm %s1752_s1, 1024 }
   0x5   :  { %s18_s20 = scalar_select %p813_p0, 0, %s1391_s17 }
   0x6   :  { %s37_s23 = sshll.u32 %s1354_s22, 4  ;;  %s1398_s23 = int_to_ptr.vmem [resolvable:$true] %s37_s23 }
   0x7   :  { %s837_s21 = sshll.u32 %s18_s20, 10 }
   0x8   :  { %s24_s26 = scalar_lea.hbm %s1752_s1, %s837_s21 }
   0x9   :  { %s1285_s27 = scalar_lea.hbm %s24_s26, 1024  ;;  %p1288_p2 = scmp.lt.s32.totalorder %s24_s26, %s1752_s1 }
   0xa   :  { %p1286_p1 = scmp.ne.s32.totalorder %s24_s26, %s1285_s27  ;;  %p1289_p3 = scmp.lt.s32.totalorder %s1287_s30, %s1285_s27 }
   0xc   :  { %p1290_p4 = por %p1289_p3, %p1288_p2 }
   0xe   :  { %p1291_p5 = pnand %p1290_p4, %p1286_p1 }
  0x10   :  { %1294 = shalt.err (!%p1291_p5)
}
  0x11   :  { %s1295_s7 = scalar_lea.vmem %s26_s19, 1024  ;;  %p1300_p7 = scmp.lt.s32.totalorder %s26_s19, %s26_s19 }
  0x12   :  { %p1296_p6 = scmp.ne.s32.totalorder %s26_s19, %s1295_s7  ;;  %p1301_p8 = scmp.lt.s32.totalorder %s1295_s7, %s1295_s7 }
  0x14   :  { %p1302_p9 = por %p1301_p8, %p1300_p7 }
  0x16   :  { %p1303_p10 = pnand %p1302_p9, %p1296_p6 }
  0x18   :  { %1306 = shalt.err (!%p1303_p10)
}
  0x19   :  { %s1355_s8 = smov 128   ;;  %s1356_s9 = smov 8  }
  0x1a   :  { %31 = dma.hbm_to_vmem [thread:$0]  %s24_s26, 1024, %s26_s19, [#allocation6], %s1355_s8, %s1355_s8, %s1356_s9  }
  0x1b   :  { %s1315_s10 = scalar_lea.vmem %s1398_s23, 2048  ;;  %p1320_p12 = scmp.lt.s32.totalorder %s1398_s23, %s1398_s23 }
  0x1c   :  { %p1316_p11 = scmp.ne.s32.totalorder %s1398_s23, %s1315_s10  ;;  %p1321_p13 = scmp.lt.s32.totalorder %s1315_s10, %s1315_s10 }
  0x1e   :  { %p1322_p0 = por %p1321_p13, %p1320_p12 }
  0x20   :  { %p1323_p1 = pnand %p1322_p0, %p1316_p11 }
  0x22   :  { %1326 = shalt.err (!%p1323_p1)
}
  0x23   :  { %43 = dma.hbm_to_vmem [thread:$0]  %s1753_s2, 2048, %s1398_s23, [#allocation9], %s1355_s8, %s1355_s8, %s1356_s9  }
  0x24   :  { %1347 = dma.done.wait [#allocation6], 1024  }
  0x25   :  { %1348 = vsyncadd [#allocation6], 4294966272 }
  0x26   :  { %1349 = dma.done.wait [#allocation9], 2048  }
  0x27   :  { %1350 = vsyncadd [#allocation9], 4294965248  ;;  %v1357_v0 = vmov 0.0   ;;  %p817_p2 = scmp.le.s32.totalorder %s1751_s0, 0 }
  0x28   :  { %62 = vst [vmem:[#allocation2] sm:$0xff] %v1357_v0  ;;  %63 = vst [vmem:[#allocation10] sm:$0xff] %v1357_v0 }
  0x29   :  { %67 = sbr.rel (%p817_p2) target bundleno = 1756 (0x6dc), region = 29 }
  0x2e   :  { %v1417_v1 = vld [vmem:[#allocation8 + $0x78] sm:$0xff]  ;;  %v1358_v2 = vmov 0.0   ;;  %v1420_v3 = vld [vmem:[#allocation8 + $0x70] sm:$0xff]  ;;  %vm1359_vm0 = vmmov 0   ;;  %v1360_v4 = vmov 0   ;;  %v1427_v5 = vld [vmem:[#allocation8 + $0x68] sm:$0xff] }
  0x2f   :  { %974 = vmatprep.subr.mxu0 %v1358_v2  ;;  %1006 = vmatprep.mubr.msk.f32.mxu0 %vm1359_vm0, %v1358_v2  ;;  %v1433_v6 = vld [vmem:[#allocation8 + $0x60] sm:$0xff]  ;;  %v1438_v7 = vld [vmem:[%s1754_s3] sm:$0xff]  ;;  %v1451_v10 = vld [vmem:[#allocation8 + $0x50] sm:$0xff] }
  0x30   :  { %975 = vmatpush3.msra.mxu0 %v1417_v1  ;;  %1264 = vset.pattern.permute.xlu0 %v1360_v4  ;;  %vm818_vm1 = vcmp.gt.s32.totalorder %v1438_v7, 0  ;;  %v1445_v8 = vld [vmem:[#allocation8 + $0x58] sm:$0xff]  ;;  %v1457_v11 = vld [vmem:[#allocation8 + $0x48] sm:$0xff]  ;;  %v1463_v12 = vld [vmem:[#allocation8 + $0x40] sm:$0xff]  ;;  %vm820_vm2 = vcmp.gt.s32.totalorder %v1438_v7, 1  ;;  %vm822_vm3 = vcmp.gt.s32.totalorder %v1438_v7, 2 }
  0x31   :  { %976 = vmatprep.subr.mxu0 %v1358_v2  ;;  %1009 = vmatprep.subr.mxu1 %v1358_v2  ;;  %v819_v9 = vsel %vm818_vm1, 1.0, %v1358_v2  ;;  %v1469_v13 = vld [vmem:[#allocation8 + $0x38] sm:$0xff]  ;;  %v1475_v14 = vld [vmem:[#allocation8 + $0x30] sm:$0xff]  ;;  %v1481_v15 = vld [vmem:[#allocation8 + $0x28] sm:$0xff]  ;;  %v821_v22 = vsel %vm820_vm2, 1.0, %v1358_v2  ;;  %v823_v28 = vsel %vm822_vm3, 1.0, %v1358_v2 }
  0x32   :  { %977 = vmatpush3.msra.mxu0 %v1420_v3  ;;  %1010 = vmatpush3.msra.mxu1 %v1417_v1  ;;  %v1487_v16 = vld [vmem:[#allocation8 + $0x20] sm:$0xff]  ;;  %v1493_v17 = vld [vmem:[#allocation8 + $0x18] sm:$0xff]  ;;  %v1499_v18 = vld [vmem:[#allocation8 + $0x10] sm:$0xff]  ;;  %vm824_vm4 = vcmp.gt.s32.totalorder %v1438_v7, 3  ;;  %vm826_vm5 = vcmp.gt.s32.totalorder %v1438_v7, 4  ;;  %vm828_vm6 = vcmp.gt.s32.totalorder %v1438_v7, 5 }
  0x33   :  { %978 = vmatprep.subr.mxu0 %v1358_v2  ;;  %1011 = vmatprep.subr.mxu1 %v1358_v2  ;;  %v1505_v19 = vld [vmem:[#allocation8 + $0x8] sm:$0xff]  ;;  %v1511_v20 = vld [vmem:[#allocation8] sm:$0xff]  ;;  %v70_v21 = vld [vmem:[#allocation2] sm:$0xff]  ;;  %v825_v41 = vsel %vm824_vm4, 1.0, %v1358_v2  ;;  %v827_v50 = vsel %vm826_vm5, 1.0, %v1358_v2  ;;  %v829_v59 = vsel %vm828_vm6, 1.0, %v1358_v2 }
  0x34   :  { %979 = vmatpush3.msra.mxu0 %v1427_v5  ;;  %1012 = vmatpush3.msra.mxu1 %v1420_v3  ;;  %v72_v23 = vld [vmem:[#allocation5] sm:$0xff]  ;;  %v173_v29 = vld [vmem:[#allocation5 + $0x8] sm:$0xff]  ;;  %v259_v42 = vld [vmem:[#allocation5 + $0x10] sm:$0xff]  ;;  %vm830_vm7 = vcmp.gt.s32.totalorder %v1438_v7, 6  ;;  %vm832_vm8 = vcmp.gt.s32.totalorder %v1438_v7, 7 }
  0x35   :  { %980 = vmatprep.subr.mxu0 %v1358_v2  ;;  %1013 = vmatprep.subr.mxu1 %v1358_v2  ;;  %v71_v35 = vld [vmem:[#allocation10] sm:$0xff]  ;;  %v345_v51 = vld [vmem:[#allocation5 + $0x18] sm:$0xff] }
  0x36   :  { %981 = vmatpush3.msra.mxu0 %v1433_v6  ;;  %167 = vperm.xlu0 %1264, %v819_v9   ;;  %v431_v60 = vld [vmem:[#allocation5 + $0x20] sm:$0xff] }
  0x37   :  { %982 = vmatprep.subr.mxu0 %v1358_v2  ;;  %1014 = vmatpush3.msra.mxu1 %v1427_v5 }
  0x38   :  { %983 = vmatpush3.msra.mxu0 %v1445_v8  ;;  %1015 = vmatprep.subr.mxu1 %v1358_v2 }
  0x39   :  { %984 = vmatprep.subr.mxu0 %v1358_v2  ;;  %1016 = vmatpush3.msra.mxu1 %v1433_v6 }
  0x3a   :  { %985 = vmatpush3.msra.mxu0 %v1451_v10  ;;  %1017 = vmatprep.subr.mxu1 %v1358_v2 }
  0x3b   :  { %986 = vmatprep.subr.mxu0 %v1358_v2  ;;  %1018 = vmatpush3.msra.mxu1 %v1445_v8 }
  0x3c   :  { %987 = vmatpush3.msra.mxu0 %v1457_v11  ;;  %1019 = vmatprep.subr.mxu1 %v1358_v2 }
  0x3d   :  { %988 = vmatprep.subr.mxu0 %v1358_v2  ;;  %1020 = vmatpush3.msra.mxu1 %v1451_v10 }
  0x3e   :  { %989 = vmatpush3.msra.mxu0 %v1463_v12  ;;  %1021 = vmatprep.subr.mxu1 %v1358_v2 }
  0x3f   :  { %990 = vmatprep.subr.mxu0 %v1358_v2  ;;  %1022 = vmatpush3.msra.mxu1 %v1457_v11 }
  0x40   :  { %991 = vmatpush3.msra.mxu0 %v1469_v13  ;;  %1023 = vmatprep.subr.mxu1 %v1358_v2 }
  0x41   :  { %992 = vmatprep.subr.mxu0 %v1358_v2  ;;  %1024 = vmatpush3.msra.mxu1 %v1463_v12 }
  0x42   :  { %993 = vmatpush3.msra.mxu0 %v1475_v14  ;;  %1025 = vmatprep.subr.mxu1 %v1358_v2 }
  0x43   :  { %994 = vmatprep.subr.mxu0 %v1358_v2  ;;  %1026 = vmatpush3.msra.mxu1 %v1469_v13 }
  0x44   :  { %995 = vmatpush3.msra.mxu0 %v1481_v15  ;;  %1027 = vmatprep.subr.mxu1 %v1358_v2 }
  0x45   :  { %996 = vmatprep.subr.mxu0 %v1358_v2  ;;  %1028 = vmatpush3.msra.mxu1 %v1475_v14 }
  0x46   :  { %997 = vmatpush3.msra.mxu0 %v1487_v16  ;;  %1029 = vmatprep.subr.mxu1 %v1358_v2 }
  0x47   :  { %998 = vmatprep.subr.mxu0 %v1358_v2  ;;  %1030 = vmatpush3.msra.mxu1 %v1481_v15 }
  0x48   :  { %999 = vmatpush3.msra.mxu0 %v1493_v17  ;;  %1031 = vmatprep.subr.mxu1 %v1358_v2 }
  0x49   :  { %1000 = vmatprep.subr.mxu0 %v1358_v2  ;;  %1032 = vmatpush3.msra.mxu1 %v1487_v16 }
  0x4a   :  { %1001 = vmatpush3.msra.mxu0 %v1499_v18  ;;  %1033 = vmatprep.subr.mxu1 %v1358_v2 }
  0x4b   :  { %1002 = vmatprep.subr.mxu0 %v1358_v2  ;;  %1034 = vmatpush3.msra.mxu1 %v1493_v17 }
  0x4c   :  { %1003 = vmatpush3.msra.mxu0 %v1505_v19  ;;  %1035 = vmatprep.subr.mxu1 %v1358_v2 }
  0x4d   :  { %1004 = vmatprep.subr.mxu0 %v1358_v2  ;;  %1036 = vmatpush3.msra.mxu1 %v1499_v18 }
  0x4e   :  { %1005 = vmatpush3.msra.mxu0 %v1511_v20  ;;  %1037 = vmatprep.subr.mxu1 %v1358_v2 }
  0x4f   :  { %1007 = vmatmul.mubr.f32.vlgmr.msra.gmra.mxu0 %v70_v21  ;;  %1038 = vmatpush3.msra.mxu1 %v1505_v19 }
  0x50   :  { %1039 = vmatprep.subr.mxu1 %v1358_v2  ;;  %1041 = vmatprep.mubr.msk.f32.mxu1 %vm1359_vm0, %v1358_v2 }
  0x51   :  { %1040 = vmatpush3.msra.mxu1 %v1511_v20  ;;  %1044 = vmatprep.subr.mxu0 %v1358_v2 }
  0x52   :  { %1045 = vmatpush3.msra.mxu0 %v1417_v1  ;;  %1076 = vmatprep.mubr.msk.f32.mxu0 %vm1359_vm0, %v1358_v2 }
  0x53   :  { %1046 = vmatprep.subr.mxu0 %v1358_v2  ;;  %1265 = vset.pattern.permute.xlu1 %v1360_v4 }
  0x54   :  { %1047 = vmatpush3.msra.mxu0 %v1420_v3  ;;  %1079 = vmatprep.subr.mxu1 %v1358_v2 }
  0x55   :  { %1048 = vmatprep.subr.mxu0 %v1358_v2  ;;  %253 = vperm.xlu0 %1264, %v821_v22  }
  0x56   :  { %1049 = vmatpush3.msra.mxu0 %v1427_v5  ;;  %339 = vperm.xlu1 %1265, %v823_v28  }
  0x57   :  { %1050 = vmatprep.subr.mxu0 %v1358_v2 }
  0x58   :  { %1051 = vmatpush3.msra.mxu0 %v1433_v6 }
  0x59   :  { %1052 = vmatprep.subr.mxu0 %v1358_v2  ;;  %511 = vperm.xlu0 %1264, %v827_v50  }
  0x5a   :  { %1053 = vmatpush3.msra.mxu0 %v1445_v8  ;;  %425 = vperm.xlu1 %1265, %v825_v41  }
  0x5b   :  { %1054 = vmatprep.subr.mxu0 %v1358_v2 }
  0x5c   :  { %1055 = vmatpush3.msra.mxu0 %v1451_v10 }
  0x5d   :  { %1056 = vmatprep.subr.mxu0 %v1358_v2 }
  0x5e   :  { %1057 = vmatpush3.msra.mxu0 %v1457_v11  ;;  %597 = vperm.xlu1 %1265, %v829_v59  }
  0x5f   :  { %1058 = vmatprep.subr.mxu0 %v1358_v2 }
  0x60   :  { %1059 = vmatpush3.msra.mxu0 %v1463_v12 }
  0x61   :  { %1060 = vmatprep.subr.mxu0 %v1358_v2 }
  0x62   :  { %1061 = vmatpush3.msra.mxu0 %v1469_v13 }
  0x63   :  { %1062 = vmatprep.subr.mxu0 %v1358_v2 }
  0x64   :  { %1063 = vmatpush3.msra.mxu0 %v1475_v14 }
  0x65   :  { %1064 = vmatprep.subr.mxu0 %v1358_v2 }
  0x66   :  { %1065 = vmatpush3.msra.mxu0 %v1481_v15 }
  0x67   :  { %1066 = vmatprep.subr.mxu0 %v1358_v2 }
  0x68   :  { %1067 = vmatpush3.msra.mxu0 %v1487_v16 }
  0x69   :  { %1068 = vmatprep.subr.mxu0 %v1358_v2 }
  0x6a   :  { %1069 = vmatpush3.msra.mxu0 %v1493_v17 }
  0x6b   :  { %1070 = vmatprep.subr.mxu0 %v1358_v2 }
  0x6c   :  { %1071 = vmatpush3.msra.mxu0 %v1499_v18 }
  0x6d   :  { %1072 = vmatprep.subr.mxu0 %v1358_v2 }
  0x6e   :  { %1073 = vmatpush3.msra.mxu0 %v1505_v19 }
  0x6f   :  { %1074 = vmatprep.subr.mxu0 %v1358_v2 }
  0x70   :  { %1075 = vmatpush3.msra.mxu0 %v1511_v20 }
  0x71   :  { %1114 = vmatprep.subr.mxu0 %v1358_v2 }
  0xb1   :  { %v168_v33 = vpop.permute.xlu0 %167 }
  0xd0   :  { %v254_v36 = vpop.permute.xlu0 %253 }
  0xd1   :  { %v340_v46 = vpop.permute.xlu1 %339 }
  0xd4   :  { %v512_v0 = vpop.permute.xlu0 %511 }
  0xd5   :  { %v426_v55 = vpop.permute.xlu1 %425 }
 0x10f   :  { %v155_v24 = vpop.f32.mrf.mxu0 }
 0x110   :  { %v159_v25 = vadd.f32 %v155_v24, %v72_v23  ;;  %v689_v24 = vld [vmem:[#allocation5 + $0x38] sm:$0xff] }
 0x111   :  { %v1008_v26 = vpop.f32.mrf.mxu0 }
 0x112   :  { %1266 = vtanh.f32 %v159_v25 }
 0x11f   :  { %v1267_v27 = vpop.eup %1266 }
 0x120   :  { %1042 = vmatmul.mubr.f32.vlgmr.msra.gmra.mxu1 %v1267_v27  ;;  %v170_v34 = vmul.f32 %v1267_v27, %v168_v33 }
 0x121   :  { %1080 = vmatpush3.msra.mxu1 %v1417_v1  ;;  %1111 = vmatprep.mubr.msk.f32.mxu1 %vm1359_vm0, %v1358_v2 }
 0x122   :  { %1081 = vmatprep.subr.mxu1 %v1358_v2  ;;  %v171_v38 = vadd.f32 %v170_v34, %v71_v35 }
 0x123   :  { %1082 = vmatpush3.msra.mxu1 %v1420_v3 }
 0x124   :  { %1083 = vmatprep.subr.mxu1 %v1358_v2 }
 0x125   :  { %1084 = vmatpush3.msra.mxu1 %v1427_v5 }
 0x126   :  { %1085 = vmatprep.subr.mxu1 %v1358_v2 }
 0x127   :  { %1086 = vmatpush3.msra.mxu1 %v1433_v6 }
 0x128   :  { %1087 = vmatprep.subr.mxu1 %v1358_v2 }
 0x129   :  { %1088 = vmatpush3.msra.mxu1 %v1445_v8 }
 0x12a   :  { %1089 = vmatprep.subr.mxu1 %v1358_v2 }
 0x12b   :  { %1090 = vmatpush3.msra.mxu1 %v1451_v10 }
 0x12c   :  { %1091 = vmatprep.subr.mxu1 %v1358_v2 }
 0x12d   :  { %1092 = vmatpush3.msra.mxu1 %v1457_v11 }
 0x12e   :  { %1093 = vmatprep.subr.mxu1 %v1358_v2 }
 0x12f   :  { %1094 = vmatpush3.msra.mxu1 %v1463_v12 }
 0x130   :  { %1095 = vmatprep.subr.mxu1 %v1358_v2 }
 0x131   :  { %1096 = vmatpush3.msra.mxu1 %v1469_v13 }
 0x132   :  { %1097 = vmatprep.subr.mxu1 %v1358_v2 }
 0x133   :  { %1098 = vmatpush3.msra.mxu1 %v1475_v14 }
 0x134   :  { %1099 = vmatprep.subr.mxu1 %v1358_v2 }
 0x135   :  { %1100 = vmatpush3.msra.mxu1 %v1481_v15 }
 0x136   :  { %1101 = vmatprep.subr.mxu1 %v1358_v2 }
 0x137   :  { %1102 = vmatpush3.msra.mxu1 %v1487_v16 }
 0x138   :  { %1103 = vmatprep.subr.mxu1 %v1358_v2 }
 0x139   :  { %1104 = vmatpush3.msra.mxu1 %v1493_v17 }
 0x13a   :  { %1105 = vmatprep.subr.mxu1 %v1358_v2 }
 0x13b   :  { %1106 = vmatpush3.msra.mxu1 %v1499_v18 }
 0x13c   :  { %1107 = vmatprep.subr.mxu1 %v1358_v2 }
 0x13d   :  { %1108 = vmatpush3.msra.mxu1 %v1505_v19 }
 0x13e   :  { %1109 = vmatprep.subr.mxu1 %v1358_v2 }
 0x13f   :  { %1110 = vmatpush3.msra.mxu1 %v1511_v20 }
 0x140   :  { %1149 = vmatprep.subr.mxu1 %v1358_v2 }
 0x1e0   :  { %v240_v30 = vpop.f32.mrf.mxu1 }
 0x1e1   :  { %v244_v31 = vadd.f32 %v240_v30, %v173_v29 }
 0x1e2   :  { %v1043_v32 = vpop.f32.mrf.mxu1 }
 0x1e3   :  { %1268 = vtanh.f32 %v244_v31 }
 0x1f0   :  { %v1269_v37 = vpop.eup %1268 }
 0x1f1   :  { %v256_v39 = vmul.f32 %v1269_v37, %v254_v36  ;;  %1077 = vmatmul.mubr.f32.vlgmr.msra.gmra.mxu0 %v1269_v37 }
 0x1f2   :  { %1115 = vmatpush3.msra.mxu0 %v1417_v1  ;;  %1146 = vmatprep.mubr.msk.f32.mxu0 %vm1359_vm0, %v1358_v2 }
 0x1f3   :  { %v257_v40 = vadd.f32 %v256_v39, %v171_v38  ;;  %1116 = vmatprep.subr.mxu0 %v1358_v2 }
 0x1f4   :  { %1117 = vmatpush3.msra.mxu0 %v1420_v3 }
 0x1f5   :  { %1118 = vmatprep.subr.mxu0 %v1358_v2 }
 0x1f6   :  { %1119 = vmatpush3.msra.mxu0 %v1427_v5 }
 0x1f7   :  { %1120 = vmatprep.subr.mxu0 %v1358_v2 }
 0x1f8   :  { %1121 = vmatpush3.msra.mxu0 %v1433_v6 }
 0x1f9   :  { %1122 = vmatprep.subr.mxu0 %v1358_v2 }
 0x1fa   :  { %1123 = vmatpush3.msra.mxu0 %v1445_v8 }
 0x1fb   :  { %1124 = vmatprep.subr.mxu0 %v1358_v2 }
 0x1fc   :  { %1125 = vmatpush3.msra.mxu0 %v1451_v10 }
 0x1fd   :  { %1126 = vmatprep.subr.mxu0 %v1358_v2 }
 0x1fe   :  { %1127 = vmatpush3.msra.mxu0 %v1457_v11 }
 0x1ff   :  { %1128 = vmatprep.subr.mxu0 %v1358_v2 }
 0x200   :  { %1129 = vmatpush3.msra.mxu0 %v1463_v12 }
 0x201   :  { %1130 = vmatprep.subr.mxu0 %v1358_v2 }
 0x202   :  { %1131 = vmatpush3.msra.mxu0 %v1469_v13 }
 0x203   :  { %1132 = vmatprep.subr.mxu0 %v1358_v2 }
 0x204   :  { %1133 = vmatpush3.msra.mxu0 %v1475_v14 }
 0x205   :  { %1134 = vmatprep.subr.mxu0 %v1358_v2 }
 0x206   :  { %1135 = vmatpush3.msra.mxu0 %v1481_v15 }
 0x207   :  { %1136 = vmatprep.subr.mxu0 %v1358_v2 }
 0x208   :  { %1137 = vmatpush3.msra.mxu0 %v1487_v16 }
 0x209   :  { %1138 = vmatprep.subr.mxu0 %v1358_v2 }
 0x20a   :  { %1139 = vmatpush3.msra.mxu0 %v1493_v17 }
 0x20b   :  { %1140 = vmatprep.subr.mxu0 %v1358_v2 }
 0x20c   :  { %1141 = vmatpush3.msra.mxu0 %v1499_v18 }
 0x20d   :  { %1142 = vmatprep.subr.mxu0 %v1358_v2 }
 0x20e   :  { %1143 = vmatpush3.msra.mxu0 %v1505_v19 }
 0x20f   :  { %1144 = vmatprep.subr.mxu0 %v1358_v2 }
 0x210   :  { %1145 = vmatpush3.msra.mxu0 %v1511_v20 }
 0x211   :  { %1184 = vmatprep.subr.mxu0 %v1358_v2 }
 0x2b1   :  { %v326_v43 = vpop.f32.mrf.mxu0 }
 0x2b2   :  { %v330_v44 = vadd.f32 %v326_v43, %v259_v42 }
 0x2b3   :  { %v1078_v45 = vpop.f32.mrf.mxu0 }
 0x2b4   :  { %1270 = vtanh.f32 %v330_v44 }
 0x2c1   :  { %v1271_v47 = vpop.eup %1270 }
 0x2c2   :  { %v342_v48 = vmul.f32 %v1271_v47, %v340_v46  ;;  %1112 = vmatmul.mubr.f32.vlgmr.msra.gmra.mxu1 %v1271_v47 }
 0x2c3   :  { %1150 = vmatpush3.msra.mxu1 %v1417_v1  ;;  %1181 = vmatprep.mubr.msk.f32.mxu1 %vm1359_vm0, %v1358_v2 }
 0x2c4   :  { %v343_v49 = vadd.f32 %v342_v48, %v257_v40  ;;  %1151 = vmatprep.subr.mxu1 %v1358_v2 }
 0x2c5   :  { %1152 = vmatpush3.msra.mxu1 %v1420_v3 }
 0x2c6   :  { %1153 = vmatprep.subr.mxu1 %v1358_v2 }
 0x2c7   :  { %1154 = vmatpush3.msra.mxu1 %v1427_v5 }
 0x2c8   :  { %1155 = vmatprep.subr.mxu1 %v1358_v2 }
 0x2c9   :  { %1156 = vmatpush3.msra.mxu1 %v1433_v6 }
 0x2ca   :  { %1157 = vmatprep.subr.mxu1 %v1358_v2 }
 0x2cb   :  { %1158 = vmatpush3.msra.mxu1 %v1445_v8 }
 0x2cc   :  { %1159 = vmatprep.subr.mxu1 %v1358_v2 }
 0x2cd   :  { %1160 = vmatpush3.msra.mxu1 %v1451_v10 }
 0x2ce   :  { %1161 = vmatprep.subr.mxu1 %v1358_v2 }
 0x2cf   :  { %1162 = vmatpush3.msra.mxu1 %v1457_v11 }
 0x2d0   :  { %1163 = vmatprep.subr.mxu1 %v1358_v2 }
 0x2d1   :  { %1164 = vmatpush3.msra.mxu1 %v1463_v12 }
 0x2d2   :  { %1165 = vmatprep.subr.mxu1 %v1358_v2 }
 0x2d3   :  { %1166 = vmatpush3.msra.mxu1 %v1469_v13 }
 0x2d4   :  { %1167 = vmatprep.subr.mxu1 %v1358_v2 }
 0x2d5   :  { %1168 = vmatpush3.msra.mxu1 %v1475_v14 }
 0x2d6   :  { %1169 = vmatprep.subr.mxu1 %v1358_v2 }
 0x2d7   :  { %1170 = vmatpush3.msra.mxu1 %v1481_v15 }
 0x2d8   :  { %1171 = vmatprep.subr.mxu1 %v1358_v2 }
 0x2d9   :  { %1172 = vmatpush3.msra.mxu1 %v1487_v16 }
 0x2da   :  { %1173 = vmatprep.subr.mxu1 %v1358_v2 }
 0x2db   :  { %1174 = vmatpush3.msra.mxu1 %v1493_v17 }
 0x2dc   :  { %1175 = vmatprep.subr.mxu1 %v1358_v2 }
 0x2dd   :  { %1176 = vmatpush3.msra.mxu1 %v1499_v18 }
 0x2de   :  { %1177 = vmatprep.subr.mxu1 %v1358_v2 }
 0x2df   :  { %1178 = vmatpush3.msra.mxu1 %v1505_v19 }
 0x2e0   :  { %1179 = vmatprep.subr.mxu1 %v1358_v2 }
 0x2e1   :  { %1180 = vmatpush3.msra.mxu1 %v1511_v20 }
 0x2e2   :  { %1219 = vmatprep.subr.mxu1 %v1358_v2 }
 0x382   :  { %v412_v52 = vpop.f32.mrf.mxu1 }
 0x383   :  { %v416_v53 = vadd.f32 %v412_v52, %v345_v51 }
 0x384   :  { %v1113_v54 = vpop.f32.mrf.mxu1 }
 0x385   :  { %1272 = vtanh.f32 %v416_v53 }
 0x392   :  { %v1273_v56 = vpop.eup %1272 }
 0x393   :  { %v428_v57 = vmul.f32 %v1273_v56, %v426_v55  ;;  %1147 = vmatmul.mubr.f32.vlgmr.msra.gmra.mxu0 %v1273_v56 }
 0x394   :  { %1185 = vmatpush3.msra.mxu0 %v1417_v1  ;;  %1216 = vmatprep.mubr.msk.f32.mxu0 %vm1359_vm0, %v1358_v2 }
 0x395   :  { %v429_v58 = vadd.f32 %v428_v57, %v343_v49  ;;  %1186 = vmatprep.subr.mxu0 %v1358_v2 }
 0x396   :  { %1187 = vmatpush3.msra.mxu0 %v1420_v3 }
 0x397   :  { %1188 = vmatprep.subr.mxu0 %v1358_v2 }
 0x398   :  { %1189 = vmatpush3.msra.mxu0 %v1427_v5 }
 0x399   :  { %1190 = vmatprep.subr.mxu0 %v1358_v2 }
 0x39a   :  { %1191 = vmatpush3.msra.mxu0 %v1433_v6 }
 0x39b   :  { %1192 = vmatprep.subr.mxu0 %v1358_v2 }
 0x39c   :  { %1193 = vmatpush3.msra.mxu0 %v1445_v8 }
 0x39d   :  { %1194 = vmatprep.subr.mxu0 %v1358_v2 }
 0x39e   :  { %1195 = vmatpush3.msra.mxu0 %v1451_v10 }
 0x39f   :  { %1196 = vmatprep.subr.mxu0 %v1358_v2 }
 0x3a0   :  { %1197 = vmatpush3.msra.mxu0 %v1457_v11 }
 0x3a1   :  { %1198 = vmatprep.subr.mxu0 %v1358_v2 }
 0x3a2   :  { %1199 = vmatpush3.msra.mxu0 %v1463_v12 }
 0x3a3   :  { %1200 = vmatprep.subr.mxu0 %v1358_v2 }
 0x3a4   :  { %1201 = vmatpush3.msra.mxu0 %v1469_v13 }
 0x3a5   :  { %1202 = vmatprep.subr.mxu0 %v1358_v2 }
 0x3a6   :  { %1203 = vmatpush3.msra.mxu0 %v1475_v14 }
 0x3a7   :  { %1204 = vmatprep.subr.mxu0 %v1358_v2 }
 0x3a8   :  { %1205 = vmatpush3.msra.mxu0 %v1481_v15 }
 0x3a9   :  { %1206 = vmatprep.subr.mxu0 %v1358_v2 }
 0x3aa   :  { %1207 = vmatpush3.msra.mxu0 %v1487_v16 }
 0x3ab   :  { %1208 = vmatprep.subr.mxu0 %v1358_v2 }
 0x3ac   :  { %1209 = vmatpush3.msra.mxu0 %v1493_v17 }
 0x3ad   :  { %1210 = vmatprep.subr.mxu0 %v1358_v2 }
 0x3ae   :  { %1211 = vmatpush3.msra.mxu0 %v1499_v18 }
 0x3af   :  { %1212 = vmatprep.subr.mxu0 %v1358_v2 }
 0x3b0   :  { %1213 = vmatpush3.msra.mxu0 %v1505_v19 }
 0x3b1   :  { %1214 = vmatprep.subr.mxu0 %v1358_v2 }
 0x3b2   :  { %1215 = vmatpush3.msra.mxu0 %v1511_v20 }
 0x453   :  { %v498_v61 = vpop.f32.mrf.mxu0 }
 0x454   :  { %v502_v62 = vadd.f32 %v498_v61, %v431_v60 }
 0x455   :  { %v1148_v63 = vpop.f32.mrf.mxu0 }
 0x456   :  { %1274 = vtanh.f32 %v502_v62 }
 0x463   :  { %v1275_v4 = vpop.eup %1274 }
 0x464   :  { %v514_v9 = vmul.f32 %v1275_v4, %v512_v0  ;;  %1182 = vmatmul.mubr.f32.vlgmr.msra.gmra.mxu1 %v1275_v4 }
 0x465   :  { %1220 = vmatpush3.msra.mxu1 %v1417_v1  ;;  %1251 = vmatprep.mubr.msk.f32.mxu1 %vm1359_vm0, %v1358_v2  ;;  %v831_v1 = vsel %vm830_vm7, 1.0, %v1358_v2 }
 0x466   :  { %v515_v21 = vadd.f32 %v514_v9, %v429_v58  ;;  %1221 = vmatprep.subr.mxu1 %v1358_v2  ;;  %683 = vperm.xlu0 %1264, %v831_v1  }
 0x467   :  { %1222 = vmatpush3.msra.mxu1 %v1420_v3  ;;  %v517_v3 = vld [vmem:[#allocation5 + $0x28] sm:$0xff] }
 0x468   :  { %1223 = vmatprep.subr.mxu1 %v1358_v2 }
 0x469   :  { %1224 = vmatpush3.msra.mxu1 %v1427_v5 }
 0x46a   :  { %1225 = vmatprep.subr.mxu1 %v1358_v2 }
 0x46b   :  { %1226 = vmatpush3.msra.mxu1 %v1433_v6 }
 0x46c   :  { %1227 = vmatprep.subr.mxu1 %v1358_v2 }
 0x46d   :  { %1228 = vmatpush3.msra.mxu1 %v1445_v8 }
 0x46e   :  { %1229 = vmatprep.subr.mxu1 %v1358_v2 }
 0x46f   :  { %1230 = vmatpush3.msra.mxu1 %v1451_v10  ;;  %v598_v10 = vpop.permute.xlu1 %597 }
 0x470   :  { %1231 = vmatprep.subr.mxu1 %v1358_v2 }
 0x471   :  { %1232 = vmatpush3.msra.mxu1 %v1457_v11 }
 0x472   :  { %1233 = vmatprep.subr.mxu1 %v1358_v2 }
 0x473   :  { %1234 = vmatpush3.msra.mxu1 %v1463_v12 }
 0x474   :  { %1235 = vmatprep.subr.mxu1 %v1358_v2 }
 0x475   :  { %1236 = vmatpush3.msra.mxu1 %v1469_v13 }
 0x476   :  { %1237 = vmatprep.subr.mxu1 %v1358_v2 }
 0x477   :  { %1238 = vmatpush3.msra.mxu1 %v1475_v14  ;;  %v833_v14 = vsel %vm832_vm8, 1.0, %v1358_v2 }
 0x478   :  { %1239 = vmatprep.subr.mxu1 %v1358_v2  ;;  %769 = vperm.xlu1 %1265, %v833_v14  }
 0x479   :  { %1240 = vmatpush3.msra.mxu1 %v1481_v15  ;;  %v603_v15 = vld [vmem:[#allocation5 + $0x30] sm:$0xff] }
 0x47a   :  { %1241 = vmatprep.subr.mxu1 %v1358_v2 }
 0x47b   :  { %1242 = vmatpush3.msra.mxu1 %v1487_v16 }
 0x47c   :  { %1243 = vmatprep.subr.mxu1 %v1358_v2 }
 0x47d   :  { %1244 = vmatpush3.msra.mxu1 %v1493_v17 }
 0x47e   :  { %1245 = vmatprep.subr.mxu1 %v1358_v2 }
 0x47f   :  { %1246 = vmatpush3.msra.mxu1 %v1499_v18 }
 0x480   :  { %1247 = vmatprep.subr.mxu1 %v1358_v2 }
 0x481   :  { %1248 = vmatpush3.msra.mxu1 %v1505_v19 }
 0x482   :  { %1249 = vmatprep.subr.mxu1 %v1358_v2 }
 0x483   :  { %1250 = vmatpush3.msra.mxu1 %v1511_v20 }
 0x4e1   :  { %v684_v19 = vpop.permute.xlu0 %683 }
 0x4f3   :  { %v770_v7 = vpop.permute.xlu1 %769 }
 0x524   :  { %v584_v5 = vpop.f32.mrf.mxu1 }
 0x525   :  { %v588_v6 = vadd.f32 %v584_v5, %v517_v3 }
 0x526   :  { %v1183_v8 = vpop.f32.mrf.mxu1 }
 0x527   :  { %1276 = vtanh.f32 %v588_v6 }
 0x534   :  { %v1277_v11 = vpop.eup %1276 }
 0x535   :  { %v600_v12 = vmul.f32 %v1277_v11, %v598_v10  ;;  %1217 = vmatmul.mubr.f32.vlgmr.msra.gmra.mxu0 %v1277_v11 }
 0x537   :  { %v601_v13 = vadd.f32 %v600_v12, %v515_v21 }
 0x5f5   :  { %v670_v16 = vpop.f32.mrf.mxu0 }
 0x5f6   :  { %v674_v17 = vadd.f32 %v670_v16, %v603_v15 }
 0x5f7   :  { %v1218_v18 = vpop.f32.mrf.mxu0 }
 0x5f8   :  { %1278 = vtanh.f32 %v674_v17 }
 0x605   :  { %v1279_v20 = vpop.eup %1278 }
 0x606   :  { %v686_v22 = vmul.f32 %v1279_v20, %v684_v19  ;;  %1252 = vmatmul.mubr.f32.vlgmr.msra.gmra.mxu1 %v1279_v20 }
 0x608   :  { %v687_v23 = vadd.f32 %v686_v22, %v601_v13 }
 0x6c6   :  { %v756_v25 = vpop.f32.mrf.mxu1 }
 0x6c7   :  { %v760_v26 = vadd.f32 %v756_v25, %v689_v24 }
 0x6c8   :  { %v1253_v27 = vpop.f32.mrf.mxu1 }
 0x6c9   :  { %1280 = vtanh.f32 %v760_v26 }
 0x6d6   :  { %v1281_v28 = vpop.eup %1280 }
 0x6d7   :  { %774 = vst [vmem:[#allocation2] sm:$0xff] %v1281_v28  ;;  %v772_v2 = vmul.f32 %v1281_v28, %v770_v7 }
 0x6d9   :  { %v773_v29 = vadd.f32 %v772_v2, %v687_v23 }
 0x6db   :  { %775 = vst [vmem:[#allocation10] sm:$0xff] %v773_v29 }
 0x6dc PF:  { %p836_p3 = scmp.ne.s32.totalorder %s1391_s17, 0 }
 0x6de   :  { %780 = sbr.rel (%p836_p3) target bundleno = 1909 (0x775), region = 33 }
 0x6e3   :  { %v781_v30 = vld [vmem:[%s1754_s3] sm:$0xff]  ;;  %v1361_v31 = vmov 0   ;;  %v785_v35 = vld [vmem:[#allocation10] sm:$0xff] }
 0x6e4   :  { %1282 = vset.pattern.permute.xlu0 %v1361_v31  ;;  %vm782_vm9 = vcmp.gt.s32.totalorder %v781_v30, 1 }
 0x6e5   :  { %v783_v32 = vsel %vm782_vm9, %v781_v30, 1 }
 0x6e6   :  { %v784_v33 = vcvt.s32.f32 %v783_v32 }
 0x6e8   :  { %1283 = vrcp.f32 %v784_v33 }
 0x6f5   :  { %v1284_v34 = vpop.eup %1283 }
 0x6f6   :  { %789 = vperm.xlu0 %1282, %v1284_v34  }
 0x771   :  { %v790_v36 = vpop.permute.xlu0 %789 }
 0x772   :  { %v792_v37 = vmul.f32 %v790_v36, %v785_v35 }
 0x774   :  { %793 = vst [vmem:[#allocation10] sm:$0xff] %v792_v37 }
 0x775 PF:  { %s1362_s16 = smov [#allocation10]  }
 0x776   :  { %s800_s17 = sshll.u32 %s1362_s16, 4  ;;  %s801_s17 = int_to_ptr.vmem [resolvable:$true] %s800_s17 }
 0x777   :  { %s1327_s18 = scalar_lea.vmem %s801_s17, 128  ;;  %p1332_p5 = scmp.lt.s32.totalorder %s801_s17, %s801_s17 }
 0x778   :  { %p1328_p4 = scmp.ne.s32.totalorder %s801_s17, %s1327_s18  ;;  %p1333_p6 = scmp.lt.s32.totalorder %s1327_s18, %s1327_s18 }
 0x77a   :  { %p1334_p7 = por %p1333_p6, %p1332_p5 }
 0x77c   :  { %p1335_p8 = pnand %p1334_p7, %p1328_p4 }
 0x77e   :  { %1338 = shalt.err (!%p1335_p8)
}
 0x77f   :  { %803 = dma.vmem_to_hbm [thread:$0]  %s801_s17, 128, %s1755_s4, [#allocation7]  }
 0x780   :  { %1351 = dma.done.wait [#allocation7], 128  }
 0x781   :  { %1352 = vsyncadd [#allocation7], 4294967168 }
 0x782   :  { %807 = vsyncpa [#allocation6], 1 }
 0x783   :  { %808 = vsyncpa [#allocation9], 1 }
 0x784   :  { %809 = vsyncpa [#allocation7], 1 }

</bundles_post_ra>
